<compile_context>
chip_gen: v6e
topology: v6e:2x2x1
jax: 0.10.0
libtpu: 0.0.40
codegen_flags: <defaults>
</compile_context>

<pallas_src>
import jax
import jax.numpy as jnp
from jax.experimental import pallas as pl
from jax.experimental.pallas import tpu as pltpu


def energy_kernel(encT_ref, w_ref, v_ref, c_ref, out_ref):
    # encT_ref: (K, tile)   augmented encoder^T columns (E enc rows + B one-hot rows)
    # w_ref:    (A, K)      augmented W = [W | (V(decoder_h)+b)^T]   (resident)
    # v_ref:    (A, 1)      weight-normed v as a column              (resident)
    # c_ref:    (1, 1)      v bias + r                                (SMEM scalar)
    # out_ref:  (1, tile)   lane-dense energy block
    hT = jnp.tanh(
        jnp.dot(w_ref[...], encT_ref[...], preferred_element_type=jnp.float32)
    )                                                         # (A, tile), full-lane
    # Full-width VPU multiply + tiny A-row sublane reduce -> (1, tile).
    e = jnp.sum(hT * v_ref[...], axis=0, keepdims=True)
    out_ref[...] = e + c_ref[0, 0]


def _pick_tile(n_rows, k_dim, *, budget_bytes=24 << 20, lane=128, itemsize=4):
    """Largest row tile that keeps the double-buffered working set under budget.

    Per streamed row (one column of enc_aug^T + one output element), double
    buffered: (2*K + 2) * itemsize bytes.  Returns n_rows (single grid step) when
    everything fits; otherwise the largest multiple of 128 that fits (never 0).
    """
    per_row = (2 * k_dim + 2) * itemsize
    max_rows = max(lane, budget_bytes // per_row)
    if n_rows <= max_rows:
        return n_rows
    return max(lane, (max_rows // lane) * lane)


def energy_forward(encoder_outputs, decoder_h, params, *, tile=None,
                   stream_dtype=None, vmem_limit_bytes=None):
    B, S, E = encoder_outputs.shape
    A = params["W"].shape[0]
    N = B * S
    K = E + B  # augmented contraction dim: encoder features + one-hot(batch) block

    # ---- tiny wrapper-side glue (plain JAX) -------------------------------------
    # enc^T so rows (N) ride the lane axis inside the kernel: (E, N).
    encT = encoder_outputs.reshape(N, E).T
    # torch .repeat(S, 1): flattened row n gets dec_proj[n % B].  Encode that as a
    # one-hot(n % B) block folded into the matmul's K dimension.
    onehotT = (jnp.arange(N)[None, :] % B == jnp.arange(B)[:, None]).astype(jnp.float32)
    enc_aug_T = jnp.concatenate([encT, onehotT], axis=0)            # (K, N)

    dec_proj_b = decoder_h @ params["V"].T + params["b"]            # (B, A), bias folded
    w_aug = jnp.concatenate([params["W"], dec_proj_b.T], axis=1)    # (A, K)

    wv, g = params["v_v"], params["v_g"]
    v_col = (g * wv / jnp.sqrt(jnp.sum(wv * wv))).reshape(A, 1)     # weight_norm(dim=0)
    c = (params["v_b"] + params["r"]).reshape(1, 1)                 # scalar: v bias + r

    if stream_dtype is not None:
        # Production-size option: halve the dominant streamed-operand HBM traffic.
        # Post-matmul math stays f32 (preferred_element_type) on all generations.
        enc_aug_T = enc_aug_T.astype(stream_dtype)
        w_aug = w_aug.astype(stream_dtype)

    # ---- tiling -----------------------------------------------------------------
    if tile is None:
        tile = _pick_tile(N, K, itemsize=jnp.dtype(enc_aug_T.dtype).itemsize)
    tile = min(tile, N) if tile >= N else tile
    n_blocks = -(-N // tile)
    n_pad = n_blocks * tile
    if n_blocks > 1:
        assert tile % 128 == 0, "multi-block grids need lane-aligned (128) tiles"
    if n_pad > N:
        enc_aug_T = jnp.pad(enc_aug_T, ((0, 0), (0, n_pad - N)))    # zero cols -> sliced off

    out = pl.pallas_call(
        energy_kernel,
        out_shape=jax.ShapeDtypeStruct((1, n_pad), jnp.float32),
        grid=(n_blocks,),
        in_specs=[
            pl.BlockSpec((K, tile), lambda i: (0, i)),              # streamed enc_aug^T
            pl.BlockSpec((A, K), lambda i: (0, 0)),                 # W_aug (resident)
            pl.BlockSpec((A, 1), lambda i: (0, 0)),                 # v column (resident)
            pl.BlockSpec(memory_space=pltpu.MemorySpace.SMEM),      # scalar c
        ],
        out_specs=pl.BlockSpec((1, tile), lambda i: (0, i)),        # lane-dense store
        compiler_params=pltpu.CompilerParams(
            dimension_semantics=("parallel",),
            vmem_limit_bytes=vmem_limit_bytes,
        ),
    )(enc_aug_T, w_aug, v_col, c)

    return out[0, :N].reshape(B, S)


def energy_ref(encoder_outputs, decoder_h, params):
    """Pure-JAX reference mirroring the PyTorch forward exactly."""
    B, S, E = encoder_outputs.shape
    enc_flat = encoder_outputs.reshape(-1, E)
    wv, g = params["v_v"], params["v_g"]
    v_eff = g * wv / jnp.sqrt(jnp.sum(wv * wv))               # [1, A]
    dec_rep = jnp.tile(decoder_h @ params["V"].T, (S, 1))     # torch .repeat(S, 1)
    h = jnp.tanh(enc_flat @ params["W"].T + dec_rep + params["b"])
    e = (h @ v_eff.T)[:, 0] + params["v_b"][0] + params["r"][0]
    return e.reshape(B, S)


def init_params(key, enc_dim=10, dec_dim=10, att_dim=10, init_r=-4.0):
    k_w, k_v, k_b, k_vv, k_vb = jax.random.split(key, 5)
    params = {
        "W": jax.random.normal(k_w, (att_dim, enc_dim), jnp.float32) * 0.1,   # Linear(enc_dim, att_dim, bias=False)
        "V": jax.random.normal(k_v, (att_dim, dec_dim), jnp.float32) * 0.1,   # Linear(dec_dim, att_dim, bias=False)
        "b": jax.random.normal(k_b, (att_dim,), jnp.float32),                 # Parameter(att_dim).normal_()
        "v_v": jax.random.normal(k_vv, (1, att_dim), jnp.float32) * 0.1,      # weight_norm direction (Linear(10, 1).weight_v)
        "v_g": jnp.array([1.0 / att_dim], jnp.float32) ** 0.5,                # weight_g = sqrt(1/att_dim)
        "v_b": jax.random.normal(k_vb, (1,), jnp.float32) * 0.1,              # Linear(10, 1).bias
        "r": jnp.array([init_r], jnp.float32),                                # Parameter([init_r])
    }
    return params


if __name__ == "__main__":
    B, S = 2, 512
    enc_dim = dec_dim = att_dim = 10   # att_dim must be 10 (module hard-codes Linear(10, 1))

    key = jax.random.PRNGKey(0)
    k_enc, k_dec, k_par = jax.random.split(key, 3)

    encoder_outputs = jax.random.normal(k_enc, (B, S, enc_dim), jnp.float32)
    decoder_h = jax.random.normal(k_dec, (B, dec_dim), jnp.float32)
    params = init_params(k_par, enc_dim, dec_dim, att_dim)

    # Default tiling: one grid step (tile = N = 1024) -- minimal per-step overhead
    # on single-TC v5e/v6e.  On v7x, pass tile=512 to give each TensorCore a block.
    out = energy_forward(encoder_outputs, decoder_h, params)
    out = jax.block_until_ready(out)

    ref = energy_ref(encoder_outputs, decoder_h, params)
    assert out.shape == (B, S)
    assert jnp.allclose(out, ref, atol=1e-4, rtol=1e-4), (out, ref)

    print("KERNEL_OK")
</pallas_src>

<mosaic_0001>
module attributes {stable_mosaic.version = 11 : i64} {
  func.func @energy_kernel(%arg0: i32, %arg1: memref<12x1024xf32, #tpu.memory_space<vmem>>, %arg2: memref<10x12xf32, #tpu.memory_space<vmem>>, %arg3: memref<10x1xf32, #tpu.memory_space<vmem>>, %arg4: memref<1x1xf32, #tpu.memory_space<smem>>, %arg5: memref<1x1024xf32, #tpu.memory_space<vmem>>) attributes {dimension_semantics = [#tpu.dimension_semantics<parallel>], iteration_bounds = array<i64: 1>, scalar_prefetch = 0 : i64, scratch_operands = 0 : i64, tpu.core_type = #tpu.core_type<tc>, window_params = [{transform_indices = @transform_0, window_bounds = array<i64: 12, 1024>}, {pipeline_mode = #tpu.pipeline_mode<synchronous>, transform_indices = @transform_1, window_bounds = array<i64: 10, 12>}, {pipeline_mode = #tpu.pipeline_mode<synchronous>, transform_indices = @transform_2, window_bounds = array<i64: 10, 1>}, {transform_indices = @transform_3, window_bounds = array<i64: 1, 1>}, {transform_indices = @transform_4, window_bounds = array<i64: 1, 1024>}]} {
    %c0 = arith.constant 0 : index
    %c0_0 = arith.constant 0 : index
    %0 = vector.load %arg2[%c0, %c0_0] : memref<10x12xf32, #tpu.memory_space<vmem>>, vector<10x12xf32>
    %c0_1 = arith.constant 0 : index
    %c0_2 = arith.constant 0 : index
    %1 = vector.load %arg1[%c0_1, %c0_2] : memref<12x1024xf32, #tpu.memory_space<vmem>>, vector<12x1024xf32>
    %cst = arith.constant dense<0.000000e+00> : vector<10x1024xf32>
    %2 = tpu.matmul %0, %1, %cst {dimension_numbers = #tpu.dot_dimension_numbers<[1], [0], [0], [1], [0, 0, 1, 1], [], []>} : vector<10x12xf32>, vector<12x1024xf32>, vector<10x1024xf32> -> vector<10x1024xf32>
    %3 = math.tanh %2 : vector<10x1024xf32>
    %c0_3 = arith.constant 0 : index
    %c0_4 = arith.constant 0 : index
    %4 = vector.load %arg3[%c0_3, %c0_4] : memref<10x1xf32, #tpu.memory_space<vmem>>, vector<10x1xf32>
    %5 = vector.broadcast %4 : vector<10x1xf32> to vector<10x1024xf32>
    %6 = arith.mulf %3, %5 : vector<10x1024xf32>
    %cst_5 = arith.constant dense<0.000000e+00> : vector<1024xf32>
    %7 = vector.multi_reduction <add>, %6, %cst_5 [0] : vector<10x1024xf32> to vector<1024xf32>
    %8 = vector.shape_cast %7 : vector<1024xf32> to vector<1x1024xf32>
    %c0_6 = arith.constant 0 : index
    %c0_7 = arith.constant 0 : index
    %9 = memref.load %arg4[%c0_6, %c0_7] : memref<1x1xf32, #tpu.memory_space<smem>>
    %10 = vector.broadcast %9 : f32 to vector<1x1024xf32>
    %11 = arith.addf %8, %10 : vector<1x1024xf32>
    %c0_8 = arith.constant 0 : index
    %c0_9 = arith.constant 0 : index
    %12 = vector.load %arg5[%c0_8, %c0_9] : memref<1x1024xf32, #tpu.memory_space<vmem>>, vector<1x1024xf32>
    tpu.vector_store %arg5[%c0_8, %c0_9], %11 {strides = array<i32>} : memref<1x1024xf32, #tpu.memory_space<vmem>>, vector<1x1024xf32>,
    return
  }
  func.func @transform_0(%arg0: i32) -> (i32, i32) {
    %c0_i32 = arith.constant 0 : i32
    %c0_i32_0 = arith.constant 0 : i32
    return %c0_i32, %arg0 : i32, i32
  }
  func.func @transform_1(%arg0: i32) -> (i32, i32) {
    %c0_i32 = arith.constant 0 : i32
    %c0_i32_0 = arith.constant 0 : i32
    %c0_i32_1 = arith.constant 0 : i32
    return %c0_i32, %c0_i32_0 : i32, i32
  }
  func.func @transform_2(%arg0: i32) -> (i32, i32) {
    %c0_i32 = arith.constant 0 : i32
    %c0_i32_0 = arith.constant 0 : i32
    %c0_i32_1 = arith.constant 0 : i32
    return %c0_i32, %c0_i32_0 : i32, i32
  }
  func.func @transform_3(%arg0: i32) -> (i32, i32) {
    %c0_i32 = arith.constant 0 : i32
    %c0_i32_0 = arith.constant 0 : i32
    %c0_i32_1 = arith.constant 0 : i32
    return %c0_i32, %c0_i32_0 : i32, i32
  }
  func.func @transform_4(%arg0: i32) -> (i32, i32) {
    %c0_i32 = arith.constant 0 : i32
    %c0_i32_0 = arith.constant 0 : i32
    return %c0_i32, %arg0 : i32, i32
  }
}

</mosaic_0001>

<bundles_post_ra>
// kernel: tpu_custom_call.1
= control target key start
LH: loop header
LB: loop body
LE: loop exit
PB: predicated region body
PF: predicated region fallthrough
CT: control target
= control target key end

     0   :  { %10 = vsyncpa [#allocation4], 0  ;;  %s781_s0 = inlined_call_operand.hbm [shape: f32[12,1024], index: 0, kind: input, shape index: {}]   ;;  %s782_s1 = inlined_call_operand.vmem [shape: f32[10,12], index: 1, kind: input, shape index: {}]   ;;  %s783_s2 = inlined_call_operand.vmem [shape: f32[10,1], index: 2, kind: input, shape index: {}]   ;;  %s784_s3 = inlined_call_operand.<no memory space> [shape: f32[1,1], index: 3, kind: input, shape index: {}]   ;;  %s785_s4 = inlined_call_operand.hbm [shape: f32[1,1024], index: 4, kind: output, shape index: {}]  }
   0x1   :  { %11 = vsyncpa [#allocation5], 0  ;;  %s684_s15 = smov [#allocation3]  }
   0x2   :  { %s17_s16 = sshll.u32 %s684_s15, 4  ;;  %s18_s16 = int_to_ptr.vmem [resolvable:$true] %s17_s16 }
   0x3   :  { %s648_s17 = scalar_lea.vmem %s18_s16, 2048  ;;  %p653_p1 = scmp.lt.s32.totalorder %s18_s16, %s18_s16 }
   0x4   :  { %p649_p0 = scmp.ne.s32.totalorder %s18_s16, %s648_s17  ;;  %p654_p2 = scmp.lt.s32.totalorder %s648_s17, %s648_s17 }
   0x6   :  { %p655_p3 = por %p654_p2, %p653_p1 }
   0x8   :  { %p656_p4 = pnand %p655_p3, %p649_p0 }
   0xa   :  { %659 = shalt.err (!%p656_p4)
}
   0xb   :  { %s685_s18 = smov 1024   ;;  %s686_s19 = smov 64  }
   0xc   :  { %23 = dma.hbm_to_vmem [thread:$0]  %s781_s0, 2048, %s18_s16, [#allocation4], %s685_s18, %s685_s18, %s686_s19  }
   0xd   :  { %680 = dma.done.wait [#allocation4], 2048  }
   0xe   :  { %681 = vsyncadd [#allocation4], 4294965248  ;;  %v687_v0 = vmov 0.0   ;;  %v688_v1 = vmov 0   ;;  %vm58_vm0 = vcmask 1043456   ;;  %v36_v6 = vld [vmem:[#allocation3 + $0x8] sm:$0xff] }
   0xf   :  { %147 = vmatprep.mubr.f32.mxu0 %v687_v0  ;;  %224 = vmatprep.mubr.f32.mxu1 %v687_v0  ;;  %v44_v2 = vld [vmem:[#allocation3 + $0x48] sm:$0xf]  ;;  %v46_v3 = vld [vmem:[#allocation3 + $0x58] sm:$0xf]  ;;  %v43_v4 = vld [vmem:[#allocation3 + $0x40] sm:$0xf] }
  0x10   :  { %607 = vset.pattern.permute.xlu0 %v688_v1  ;;  %584 = vmatprep.subr.msk.mxu0 %vm58_vm0, %v44_v2  ;;  %v45_v5 = vld [vmem:[#allocation3 + $0x50] sm:$0xf]  ;;  %v38_v7 = vld [vmem:[#allocation3 + $0x18] sm:$0xff]  ;;  %v35_v8 = vld [vmem:[#allocation3] sm:$0xff]  ;;  %vm51_vm1 = vcmask 97280   ;;  %vm435_vm2 = vcmask 1041408  }
  0x11   :  { %588 = vmatprep.subr.msk.mxu1 %vm58_vm0, %v46_v3  ;;  %585 = vmatpush1.msk.msra.mxu0 %vm58_vm0, %v43_v4  ;;  %v37_v9 = vld [vmem:[#allocation3 + $0x10] sm:$0xff]  ;;  %v33_v10 = vld [vmem:[%s782_s1] sm:$0xff]  ;;  %v48_v11 = vld [vmem:[#allocation3 + $0x68] sm:$0xf] }
  0x12   :  { %589 = vmatpush1.msk.msra.mxu1 %vm58_vm0, %v45_v5  ;;  %113 = vmatprep.subr.mxu0 %v36_v6  ;;  %v50_v12 = vld [vmem:[#allocation3 + $0x78] sm:$0xf]  ;;  %v47_v13 = vld [vmem:[#allocation3 + $0x60] sm:$0xf]  ;;  %v49_v14 = vld [vmem:[#allocation3 + $0x70] sm:$0xf]  ;;  %v760_v6 = vstv %s784_s3 }
  0x13   :  { %190 = vmatprep.subr.mxu1 %v38_v7  ;;  %114 = vmatpush1.msra.mxu0 %v35_v8  ;;  %v34_v15 = vld [vmem:[%s782_s1 + $0x8] sm:$0x3]  ;;  %v42_v17 = vld [vmem:[#allocation3 + $0x38] sm:$0xff]  ;;  %v39_v18 = vld [vmem:[#allocation3 + $0x20] sm:$0xff]  ;;  %s690_s3 = smov [#allocation6]  }
  0x14   :  { %191 = vmatpush1.msra.mxu1 %v37_v9  ;;  %586 = vmatmul.mubr.msk.f32.vlgmr.msra.gmra.mxu0 %vm51_vm1, %v33_v10  ;;  %v40_v16 = vld [vmem:[#allocation3 + $0x28] sm:$0xff]  ;;  %v41_v19 = vld [vmem:[#allocation3 + $0x30] sm:$0xff]  ;;  %v407_v21 = vld [vmem:[%s783_s2] sm:$0xff]  ;;  %s575_s29 = sshll.u32 %s690_s3, 4  ;;  %s576_s29 = int_to_ptr.vmem [resolvable:$true] %s575_s29 }
  0x15   :  { %590 = vmatmul.mubr.msk.f32.vlgmr.msra.gmra.mxu1 %vm51_vm1, %v33_v10  ;;  %592 = vmatprep.subr.msk.mxu0 %vm58_vm0, %v48_v11  ;;  %v408_v20 = vld [vmem:[%s783_s2 + $0x8] sm:$0x3]  ;;  %s660_s30 = scalar_lea.vmem %s576_s29, 128  ;;  %p665_p6 = scmp.lt.s32.totalorder %s576_s29, %s576_s29 }
  0x16   :  { %596 = vmatprep.subr.msk.mxu1 %vm58_vm0, %v50_v12  ;;  %593 = vmatpush1.msk.msra.mxu0 %vm58_vm0, %v47_v13  ;;  %p661_p5 = scmp.ne.s32.totalorder %s576_s29, %s660_s30  ;;  %p666_p7 = scmp.lt.s32.totalorder %s660_s30, %s660_s30 }
  0x17   :  { %597 = vmatpush1.msk.msra.mxu1 %vm58_vm0, %v49_v14  ;;  %153 = vmatprep.mubr.f32.mxu0 %v687_v0 }
  0x18   :  { %230 = vmatprep.mubr.f32.mxu1 %v687_v0  ;;  %587 = vmatmul.mubr.msk.f32.gmra.mxu0 %vm51_vm1, %v34_v15  ;;  %p667_p8 = por %p666_p7, %p665_p6 }
  0x19   :  { %591 = vmatmul.mubr.msk.f32.gmra.mxu1 %vm51_vm1, %v34_v15  ;;  %267 = vmatprep.subr.mxu0 %v40_v16 }
  0x1a   :  { %344 = vmatprep.subr.mxu1 %v42_v17  ;;  %268 = vmatpush1.msra.mxu0 %v39_v18  ;;  %p668_p9 = pnand %p667_p8, %p661_p5 }
  0x1b   :  { %345 = vmatpush1.msra.mxu1 %v41_v19  ;;  %301 = vmatprep.mubr.f32.mxu0 %v687_v0 }
  0x1c   :  { %378 = vmatprep.mubr.f32.mxu1 %v687_v0  ;;  %594 = vmatmul.mubr.msk.f32.vlgmr.msra.gmra.mxu0 %vm51_vm1, %v33_v10 }
  0x1d   :  { %598 = vmatmul.mubr.msk.f32.vlgmr.msra.gmra.mxu1 %vm51_vm1, %v33_v10  ;;  %307 = vmatprep.mubr.f32.mxu0 %v687_v0 }
  0x1e   :  { %384 = vmatprep.mubr.f32.mxu1 %v687_v0  ;;  %416 = vperm.xlu0 %607, %v408_v20  }
  0x20   :  { %595 = vmatmul.mubr.msk.f32.gmra.mxu0 %vm51_vm1, %v34_v15 }
  0x21   :  { %599 = vmatmul.mubr.msk.f32.gmra.mxu1 %vm51_vm1, %v34_v15 }
  0x22   :  { %411 = vperm.xlu0 %607, %v407_v21  }
  0x99   :  { %v747_v34 = vpop.permute.xlu0 %416 }
  0x9d   :  { %v412_v43 = vpop.permute.xlu0 %411 }
  0xd4   :  { %v149_v22 = vpop.f32.mrf.mxu0 }
  0xd5   :  { %v226_v23 = vpop.f32.mrf.mxu1  ;;  %608 = vtanh.f32 %v149_v22 }
  0xd6   :  { %610 = vtanh.f32 %v226_v23  ;;  %v151_v24 = vpop.f32.mrf.mxu0 }
  0xd7   :  { %v228_v25 = vpop.f32.mrf.mxu1  ;;  %612 = vtanh.f32 %v151_v24 }
  0xd8   :  { %614 = vtanh.f32 %v228_v25  ;;  %v155_v26 = vpop.f32.mrf.mxu0 }
  0xd9   :  { %v232_v27 = vpop.f32.mrf.mxu1  ;;  %616 = vtanh.f32 %v155_v26 }
  0xda   :  { %618 = vtanh.f32 %v232_v27  ;;  %v157_v28 = vpop.f32.mrf.mxu0 }
  0xdb   :  { %v234_v29 = vpop.f32.mrf.mxu1  ;;  %620 = vtanh.f32 %v157_v28 }
  0xdc   :  { %622 = vtanh.f32 %v234_v29  ;;  %v303_v30 = vpop.f32.mrf.mxu0 }
  0xdd   :  { %v380_v31 = vpop.f32.mrf.mxu1  ;;  %624 = vtanh.f32 %v303_v30 }
  0xde   :  { %626 = vtanh.f32 %v380_v31  ;;  %v305_v32 = vpop.f32.mrf.mxu0 }
  0xdf   :  { %v382_v33 = vpop.f32.mrf.mxu1  ;;  %628 = vtanh.f32 %v305_v32 }
  0xe0   :  { %630 = vtanh.f32 %v382_v33  ;;  %v309_v35 = vpop.f32.mrf.mxu0 }
  0xe1   :  { %v386_v36 = vpop.f32.mrf.mxu1  ;;  %632 = vtanh.f32 %v309_v35 }
  0xe2   :  { %v609_v37 = vpop.eup %608  ;;  %634 = vtanh.f32 %v386_v36  ;;  %v311_v38 = vpop.f32.mrf.mxu0 }
  0xe3   :  { %v388_v39 = vpop.f32.mrf.mxu1  ;;  %v611_v40 = vpop.eup %610  ;;  %636 = vtanh.f32 %v311_v38  ;;  %v419_v49 = vmul.f32 %v609_v37, %v412_v43 }
  0xe4   :  { %v613_v41 = vpop.eup %612  ;;  %638 = vtanh.f32 %v388_v39  ;;  %v421_v52 = vmul.f32 %v611_v40, %v412_v43  ;;  %v689_v39 = vmov 1966171168  }
  0xe5   :  { %v615_v42 = vpop.eup %614  ;;  %v420_v56 = vmul.f32 %v613_v41, %v412_v43  ;;  %v523_v40 = vunpack.c.l.s4 %v689_v39 }
  0xe6   :  { %v617_v44 = vpop.eup %616  ;;  %v422_v60 = vmul.f32 %v615_v42, %v412_v43 }
  0xe7   :  { %v619_v45 = vpop.eup %618  ;;  %v427_v46 = vmul.f32 %v617_v44, %v747_v34 }
  0xe8   :  { %v621_v47 = vpop.eup %620  ;;  %v429_v48 = vmul.f32 %v619_v45, %v747_v34 }
  0xe9   :  { %v623_v50 = vpop.eup %622  ;;  %v428_v51 = vmul.f32 %v621_v47, %v747_v34  ;;  %v436_v53 = vsel %vm435_vm2, %v427_v46, 0.0 }
  0xea   :  { %v625_v54 = vpop.eup %624  ;;  %v430_v55 = vmul.f32 %v623_v50, %v747_v34  ;;  %v437_v57 = vadd.f32 %v436_v53, %v419_v49  ;;  %v452_v58 = vsel %vm435_vm2, %v429_v48, 0.0 }
  0xeb   :  { %v627_v59 = vpop.eup %626  ;;  %v444_v61 = vsel %vm435_vm2, %v428_v51, 0.0  ;;  %v453_v62 = vadd.f32 %v452_v58, %v421_v52  ;;  %v423_v8 = vmul.f32 %v625_v54, %v412_v43  ;;  %v525_v51 = vlaneseq }
  0xec   :  { %v629_v63 = vpop.eup %628  ;;  %v438_v0 = vrot.slane %v437_v57, 4  ;;  %v445_v1 = vadd.f32 %v444_v61, %v420_v56  ;;  %v460_v2 = vsel %vm435_vm2, %v430_v55, 0.0  ;;  %v425_v9 = vmul.f32 %v627_v59, %v412_v43 }
  0xed   :  { %v631_v3 = vpop.eup %630  ;;  %v454_v4 = vrot.slane %v453_v62, 4  ;;  %v461_v5 = vadd.f32 %v460_v2, %v422_v60  ;;  %v424_v14 = vmul.f32 %v629_v63, %v412_v43  ;;  %v524_v55 = vunpack.c.0.s8 %v523_v40 }
  0xee   :  { %v633_v7 = vpop.eup %632  ;;  %v439_v10 = vadd.f32 %v438_v0, %v437_v57  ;;  %v446_v11 = vrot.slane %v445_v1, 4  ;;  %v426_v19 = vmul.f32 %v631_v3, %v412_v43  ;;  %v526_v3 = vshrl.u32 %v525_v51, 7 }
  0xef   :  { %v635_v12 = vpop.eup %634  ;;  %v431_v13 = vmul.f32 %v633_v7, %v747_v34  ;;  %v455_v15 = vadd.f32 %v454_v4, %v453_v62  ;;  %v462_v16 = vrot.slane %v461_v5, 4 }
  0xf0   :  { %v637_v17 = vpop.eup %636  ;;  %v433_v18 = vmul.f32 %v635_v12, %v747_v34  ;;  %v447_v20 = vadd.f32 %v446_v11, %v445_v1  ;;  %v440_v21 = vrot.slane %v439_v10, 2 }
  0xf1   :  { %v639_v22 = vpop.eup %638  ;;  %v468_v23 = vsel %vm435_vm2, %v431_v13, 0.0  ;;  %v432_v24 = vmul.f32 %v637_v17, %v747_v34  ;;  %v463_v25 = vadd.f32 %v462_v16, %v461_v5  ;;  %v456_v26 = vrot.slane %v455_v15, 2 }
  0xf2   :  { %v484_v27 = vsel %vm435_vm2, %v433_v18, 0.0  ;;  %v434_v28 = vmul.f32 %v639_v22, %v747_v34  ;;  %v469_v29 = vadd.f32 %v468_v23, %v423_v8  ;;  %v441_v30 = vadd.f32 %v440_v21, %v439_v10 }
  0xf3   :  { %v476_v31 = vsel %vm435_vm2, %v432_v24, 0.0  ;;  %v485_v32 = vadd.f32 %v484_v27, %v425_v9  ;;  %v448_v33 = vrot.slane %v447_v20, 2  ;;  %v457_v35 = vadd.f32 %v456_v26, %v455_v15 }
  0xf4   :  { %v492_v36 = vsel %vm435_vm2, %v434_v28, 0.0  ;;  %v470_v37 = vrot.slane %v469_v29, 4  ;;  %v477_v38 = vadd.f32 %v476_v31, %v424_v14  ;;  %v442_v43 = vrot.slane %v441_v30, 1 }
  0xf5   :  { %v486_v41 = vrot.slane %v485_v32, 4  ;;  %v493_v42 = vadd.f32 %v492_v36, %v426_v19  ;;  %v449_v44 = vadd.f32 %v448_v33, %v447_v20  ;;  %v458_v34 = vrot.slane %v457_v35, 1 }
  0xf6   :  { %v471_v45 = vadd.f32 %v470_v37, %v469_v29  ;;  %v478_v46 = vrot.slane %v477_v38, 4  ;;  %v464_v47 = vrot.slane %v463_v25, 2  ;;  %v443_v57 = vadd.f32 %v442_v43, %v441_v30 }
  0xf7   :  { %v487_v48 = vadd.f32 %v486_v41, %v485_v32  ;;  %v494_v49 = vrot.slane %v493_v42, 4  ;;  %v450_v50 = vrot.slane %v449_v44, 1  ;;  %v459_v60 = vadd.f32 %v458_v34, %v457_v35 }
  0xf8   :  { %v479_v52 = vadd.f32 %v478_v46, %v477_v38  ;;  %v465_v53 = vadd.f32 %v464_v47, %v463_v25  ;;  %v472_v54 = vrot.slane %v471_v45, 2  ;;  %v502_v10 = vadd.f32 %v760_v6, %v443_v57 }
  0xf9   :  { %v495_v56 = vadd.f32 %v494_v49, %v493_v42  ;;  %v451_v58 = vadd.f32 %v450_v50, %v449_v44  ;;  %v488_v59 = vrot.slane %v487_v48, 2  ;;  %v504_v13 = vadd.f32 %v760_v6, %v459_v60 }
  0xfa   :  { %v466_v61 = vrot.slane %v465_v53, 1  ;;  %v473_v62 = vadd.f32 %v472_v54, %v471_v45  ;;  %v480_v63 = vrot.slane %v479_v52, 2  ;;  %v527_v18 = vsub.s32 %v524_v55, %v526_v3 }
  0xfb   :  { %v489_v0 = vadd.f32 %v488_v59, %v487_v48  ;;  %v496_v1 = vrot.slane %v495_v56, 2  ;;  %v503_v2 = vadd.f32 %v760_v6, %v451_v58 }
  0xfc   :  { %v467_v4 = vadd.f32 %v466_v61, %v465_v53  ;;  %v474_v5 = vrot.slane %v473_v62, 1  ;;  %v481_v7 = vadd.f32 %v480_v63, %v479_v52 }
  0xfd   :  { %v490_v8 = vrot.slane %v489_v0, 1  ;;  %v497_v9 = vadd.f32 %v496_v1, %v495_v56  ;;  %v518_v17 = vcombine.low %v502_v10, %v503_v2 }
  0xfe   :  { %v475_v11 = vadd.f32 %v474_v5, %v473_v62  ;;  %v482_v12 = vrot.slane %v481_v7, 1  ;;  %v505_v14 = vadd.f32 %v760_v6, %v467_v4 }
  0xff   :  { %v491_v15 = vadd.f32 %v490_v8, %v489_v0  ;;  %v498_v16 = vrot.slane %v497_v9, 1  ;;  %v528_v26 = vrot.slane %v518_v17, %v527_v18 }
 0x100   :  { %v483_v19 = vadd.f32 %v482_v12, %v481_v7  ;;  %v519_v20 = vcombine.low %v504_v13, %v505_v14  ;;  %v506_v22 = vadd.f32 %v760_v6, %v475_v11 }
 0x101   :  { %v499_v21 = vadd.f32 %v498_v16, %v497_v9  ;;  %v508_v24 = vadd.f32 %v760_v6, %v491_v15 }
 0x102   :  { %v507_v23 = vadd.f32 %v760_v6, %v483_v19  ;;  %v535_v27 = vrot.slane %v519_v20, %v527_v18 }
 0x103   :  { %v509_v25 = vadd.f32 %v760_v6, %v499_v21 }
 0x104   :  { %v520_v28 = vcombine.low %v506_v22, %v507_v23  ;;  %v550_v32 = vcombine.low %v528_v26, %v535_v27 }
 0x105   :  { %v521_v29 = vcombine.low %v508_v24, %v509_v25 }
 0x106   :  { %v542_v30 = vrot.slane %v520_v28, %v527_v18  ;;  %v558_v35 = vrot.slane %v550_v32, %v527_v18 }
 0x107   :  { %v549_v31 = vrot.slane %v521_v29, %v527_v18 }
 0x109   :  { %v551_v33 = vcombine.low %v542_v30, %v549_v31 }
 0x10b   :  { %v565_v36 = vrot.slane %v551_v33, %v527_v18 }
 0x10d   :  { %v566_v37 = vcombine.low %v558_v35, %v565_v36 }
 0x10f   :  { %568 = vst [vmem:[#allocation6] sm:$0xff] %v566_v37 }
 0x110   :  { %671 = shalt.err (!%p668_p9)
}
 0x111   :  { %578 = dma.vmem_to_hbm [thread:$0]  %s576_s29, 128, %s785_s4, [#allocation5]  }
 0x112   :  { %682 = dma.done.wait [#allocation5], 128  }
 0x113   :  { %683 = vsyncadd [#allocation5], 4294967168 }
 0x114   :  { %582 = vsyncpa [#allocation4], 1 }
 0x115   :  { %583 = vsyncpa [#allocation5], 1 }

</bundles_post_ra>
